<compile_context>
chip_gen: v7x
topology: tpu7x:2x2x1
jax: 0.10.0
libtpu: 0.0.40
codegen_flags: <defaults>
</compile_context>

<pallas_src>
import functools

import jax
import jax.numpy as jnp
import numpy as np
from jax import lax
from jax.experimental import pallas as pl
from jax.experimental.pallas import tpu as pltpu

_VMEM_LIMIT_BYTES = 40 * 1024 * 1024     # safe scoped-VMEM cap on v5e/v6e/v7x
_TARGET_BLOCK_BYTES = 4 * 1024 * 1024    # ~4 MiB per buffer (amortizes per-step overhead)
_MAX_BLOCK_BYTES = 6 * 1024 * 1024       # hard per-buffer cap: 2x(in+out)+f32 temps < limit
_BN_FUSED_MAX_BYTES = 6 * 1024 * 1024    # fused (x-resident) BN when padded f32 x fits this


def get_groupnorm_groups(num_ch, norm_style):
    if 'ch' in norm_style:
        ch = int(norm_style.split('_')[-1])
        groups = max(num_ch // ch, 1)
    elif 'grp' in norm_style:
        groups = int(norm_style.split('_')[-1])
    else:
        groups = 16
    return groups


# ----------------------------------------------------------------------------
# Tile-size helpers
# ----------------------------------------------------------------------------
def _sublane_multiple(dtype):
    # f32 -> 8, bf16 -> 16, int8/fp8 -> 32 (sub-32-bit dtypes pack along sublanes).
    return max(8, 32 // jnp.dtype(dtype).itemsize)


def _pad_to(v, m):
    return ((v + m - 1) // m) * m


def _pick_row_block(num_rows, row_bytes, dtype,
                    target_bytes=_TARGET_BLOCK_BYTES, max_bytes=_MAX_BLOCK_BYTES):
    """Row-block with ~target_bytes per buffer, rounded to the sublane multiple."""
    mult = _sublane_multiple(dtype)
    rows = int(max(1, target_bytes // max(1, row_bytes)))
    if rows >= num_rows:
        return num_rows
    if rows >= mult:
        return (rows // mult) * mult
    # Long rows: round *up* to a full sublane multiple when the larger block still
    # fits the hard cap (keeps (8,128)-conformant blocks and dense DMA).
    if mult * row_bytes <= max_bytes:
        return min(mult, num_rows)
    # TODO(synk): tile the lane dimension for extremely long rows instead of
    # emitting a sub-sublane-multiple row block (Mosaic pads it, slower).
    return max(1, int(max_bytes // max(1, row_bytes)))


def _pick_hw_block(hw, c, itemsize, target_bytes=_TARGET_BLOCK_BYTES):
    """Lane-aligned (multiple-of-128) divisor of HW for the BN stats pass."""
    if c * hw * itemsize <= target_bytes:
        return hw
    max_hwb = max(128, target_bytes // max(1, c * itemsize))
    best = None
    d = 128
    while d <= min(hw, max_hwb):
        if hw % d == 0:
            best = d
        d += 128
    # TODO(synk): when HW has no 128-multiple divisor, tile channels instead of
    # falling back to the full-HW block (can exceed the VMEM target for huge C*HW).
    return best if best is not None else hw


# ----------------------------------------------------------------------------
# Kernel A: instance-norm rows — per-row stats + scalar affine, single fused pass
#   x_ref: (Rb, HW), g_ref/b_ref: (Rb, 1)
# ----------------------------------------------------------------------------
def _inst_norm_kernel(x_ref, g_ref, b_ref, o_ref, *, eps):
    xf = x_ref[...].astype(jnp.float32)                       # (Rb, HW)
    cnt = float(xf.shape[1])
    s = jnp.sum(xf, axis=1, keepdims=True)                    # one-pass stats
    sq = jnp.sum(xf * xf, axis=1, keepdims=True)
    mean = s / cnt
    var = jnp.maximum(sq / cnt - mean * mean, 0.0)            # clamp f32 cancellation
    scale = lax.rsqrt(var + eps)
    a = g_ref[...].astype(jnp.float32) * scale                 # (Rb, 1)
    c = b_ref[...].astype(jnp.float32) - mean * a
    o_ref[...] = (xf * a + c).astype(o_ref.dtype)


def _run_inst_norm(x2, g2, b2, *, eps, row_block=None):
    R, L = x2.shape
    row_bytes = _pad_to(L, 128) * x2.dtype.itemsize
    Rb = row_block if row_block is not None else _pick_row_block(R, row_bytes, x2.dtype)
    return pl.pallas_call(
        functools.partial(_inst_norm_kernel, eps=eps),
        out_shape=jax.ShapeDtypeStruct((R, L), x2.dtype),
        grid=(pl.cdiv(R, Rb),),
        in_specs=[
            pl.BlockSpec((Rb, L), lambda i: (i, 0)),
            pl.BlockSpec((Rb, 1), lambda i: (i, 0)),
            pl.BlockSpec((Rb, 1), lambda i: (i, 0)),
        ],
        out_specs=pl.BlockSpec((Rb, L), lambda i: (i, 0)),
        compiler_params=pltpu.CompilerParams(
            dimension_semantics=("parallel",),
            vmem_limit_bytes=_VMEM_LIMIT_BYTES),
    )(x2, g2, b2)


# ----------------------------------------------------------------------------
# Kernel B: group-norm — 3-D block (Rb, Cg, HW), per-group stats over axes (1,2),
#   per-channel affine via broadcast FMA, one full-tile dense store.
#   g_ref/b_ref: (Rb, Cg, 1)
# ----------------------------------------------------------------------------
def _group_norm_kernel(x_ref, g_ref, b_ref, o_ref, *, eps):
    xf = x_ref[...].astype(jnp.float32)                       # (Rb, Cg, HW)
    cnt = float(xf.shape[1] * xf.shape[2])
    s = jnp.sum(jnp.sum(xf, axis=2, keepdims=True), axis=1, keepdims=True)        # (Rb,1,1)
    sq = jnp.sum(jnp.sum(xf * xf, axis=2, keepdims=True), axis=1, keepdims=True)
    mean = s / cnt
    var = jnp.maximum(sq / cnt - mean * mean, 0.0)
    scale = lax.rsqrt(var + eps)                              # (Rb, 1, 1)
    a = g_ref[...].astype(jnp.float32) * scale                # (Rb, Cg, 1)
    c = b_ref[...].astype(jnp.float32) - mean * a
    o_ref[...] = (xf * a + c).astype(o_ref.dtype)


def _run_group_norm(x3, g3, b3, *, eps, row_block=None):
    R, Cg, HW = x3.shape
    row_bytes = _pad_to(Cg, 8) * _pad_to(HW, 128) * x3.dtype.itemsize
    Rb = row_block if row_block is not None else _pick_row_block(R, row_bytes, x3.dtype)
    return pl.pallas_call(
        functools.partial(_group_norm_kernel, eps=eps),
        out_shape=jax.ShapeDtypeStruct((R, Cg, HW), x3.dtype),
        grid=(pl.cdiv(R, Rb),),
        in_specs=[
            pl.BlockSpec((Rb, Cg, HW), lambda i: (i, 0, 0)),
            pl.BlockSpec((Rb, Cg, 1), lambda i: (i, 0, 0)),
            pl.BlockSpec((Rb, Cg, 1), lambda i: (i, 0, 0)),
        ],
        out_specs=pl.BlockSpec((Rb, Cg, HW), lambda i: (i, 0, 0)),
        compiler_params=pltpu.CompilerParams(
            dimension_semantics=("parallel",),
            vmem_limit_bytes=_VMEM_LIMIT_BYTES),
    )(x3, g3, b3)


# ----------------------------------------------------------------------------
# Kernel C: per-row scale/shift (BN phase-2 and 'nonorm')
#   x_ref: (Rb, L), a_ref/c_ref: (Rb, 1) float32
# ----------------------------------------------------------------------------
def _row_scale_shift_kernel(x_ref, a_ref, c_ref, o_ref):
    xf = x_ref[...].astype(jnp.float32)
    o_ref[...] = (xf * a_ref[...] + c_ref[...]).astype(o_ref.dtype)


def _run_row_scale_shift(x2, a2, c2, *, row_block=None):
    R, L = x2.shape
    row_bytes = _pad_to(L, 128) * x2.dtype.itemsize
    Rb = row_block if row_block is not None else _pick_row_block(R, row_bytes, x2.dtype)
    return pl.pallas_call(
        _row_scale_shift_kernel,
        out_shape=jax.ShapeDtypeStruct((R, L), x2.dtype),
        grid=(pl.cdiv(R, Rb),),
        in_specs=[
            pl.BlockSpec((Rb, L), lambda i: (i, 0)),
            pl.BlockSpec((Rb, 1), lambda i: (i, 0)),
            pl.BlockSpec((Rb, 1), lambda i: (i, 0)),
        ],
        out_specs=pl.BlockSpec((Rb, L), lambda i: (i, 0)),
        compiler_params=pltpu.CompilerParams(
            dimension_semantics=("parallel",),
            vmem_limit_bytes=_VMEM_LIMIT_BYTES),
    )(x2, a2, c2)


# ----------------------------------------------------------------------------
# Kernel D: BN stats pass — lane-wide (C, 128) partial sums, grid "parallel" over N
#   (megacore-shardable) and "arbitrary" over HW tiles; per-step work is plain
#   VALU adds on 128-lane chunks (no per-step XLU reductions / 1-lane accumulators).
# ----------------------------------------------------------------------------
def _bn_stats_kernel(x_ref, sum_ref, sq_ref, *, lane_chunks):
    @pl.when(pl.program_id(1) == 0)
    def _init():
        sum_ref[...] = jnp.zeros_like(sum_ref)
        sq_ref[...] = jnp.zeros_like(sq_ref)

    xf = x_ref[0].astype(jnp.float32)                          # (C, HWb)
    if lane_chunks:                                            # HWb % 128 == 0
        c = xf.shape[0]
        s = jnp.zeros((c, 128), jnp.float32)
        q = jnp.zeros((c, 128), jnp.float32)
        for k in range(xf.shape[1] // 128):                    # static, lane-aligned slices
            blk = xf[:, k * 128:(k + 1) * 128]
            s = s + blk
            q = q + blk * blk
        sum_ref[0] += s
        sq_ref[0] += q
    else:
        # Fallback (HW not a multiple of 128): lane reduce per step, lane 0 only.
        sum_ref[0, :, 0:1] += jnp.sum(xf, axis=1, keepdims=True)
        sq_ref[0, :, 0:1] += jnp.sum(xf * xf, axis=1, keepdims=True)


def _run_bn_stats(x3, *, hw_block=None):
    N, C, HW = x3.shape
    HWb = hw_block if hw_block is not None else _pick_hw_block(HW, C, x3.dtype.itemsize)
    assert HW % HWb == 0, "BN stats tile must divide H*W exactly"
    kernel = functools.partial(_bn_stats_kernel, lane_chunks=(HWb % 128 == 0))
    return pl.pallas_call(
        kernel,
        out_shape=(jax.ShapeDtypeStruct((N, C, 128), jnp.float32),
                   jax.ShapeDtypeStruct((N, C, 128), jnp.float32)),
        grid=(N, HW // HWb),
        in_specs=[pl.BlockSpec((1, C, HWb), lambda n, h: (n, 0, h))],
        out_specs=(pl.BlockSpec((1, C, 128), lambda n, h: (n, 0, 0)),
                   pl.BlockSpec((1, C, 128), lambda n, h: (n, 0, 0))),
        compiler_params=pltpu.CompilerParams(
            dimension_semantics=("parallel", "arbitrary"),
            vmem_limit_bytes=_VMEM_LIMIT_BYTES),
    )(x3)


# ----------------------------------------------------------------------------
# Kernel E: fused BN for activations that fit VMEM — x read once, written once.
#   x_ref: (N, C, HW), g_ref/b_ref: (N, C, 1)
# ----------------------------------------------------------------------------
def _bn_fused_kernel(x_ref, g_ref, b_ref, o_ref, *, eps):
    xf = x_ref[...].astype(jnp.float32)                        # (N, C, HW)
    n, _, hw = xf.shape
    cnt = float(n * hw)
    s = jnp.sum(jnp.sum(xf, axis=2, keepdims=True), axis=0, keepdims=True)        # (1,C,1)
    sq = jnp.sum(jnp.sum(xf * xf, axis=2, keepdims=True), axis=0, keepdims=True)
    mean = s / cnt
    var = jnp.maximum(sq / cnt - mean * mean, 0.0)
    scale = lax.rsqrt(var + eps)
    a = g_ref[...].astype(jnp.float32) * scale                 # (N, C, 1)
    c = b_ref[...].astype(jnp.float32) - mean * a
    o_ref[...] = (xf * a + c).astype(o_ref.dtype)


def _run_bn_fused(x3, g3, b3, *, eps):
    N, C, HW = x3.shape
    return pl.pallas_call(
        functools.partial(_bn_fused_kernel, eps=eps),
        out_shape=jax.ShapeDtypeStruct((N, C, HW), x3.dtype),
        compiler_params=pltpu.CompilerParams(vmem_limit_bytes=_VMEM_LIMIT_BYTES),
    )(x3, g3, b3)


# ----------------------------------------------------------------------------
# Wrapper replicating ConfigurableNorm.forward
# ----------------------------------------------------------------------------
def configurable_norm_pallas(x, gain, bias, *, norm_style='bn',
                             input_gain_bias=False, eps=1e-5,
                             _row_block=None, _hw_block=None, _bn_fuse=None):
    """x: (N, C, H, W).  gain/bias: (N, C) if input_gain_bias else (C,)."""
    N, C, H, W = x.shape
    HW = H * W

    if input_gain_bias:
        g_nc = gain.reshape(N, C)
        b_nc = bias.reshape(N, C)
    else:
        # Parameter arrays are tiny; materializing the broadcast keeps BlockSpecs uniform.
        g_nc = jnp.broadcast_to(jnp.reshape(gain, (1, C)), (N, C))
        b_nc = jnp.broadcast_to(jnp.reshape(bias, (1, C)), (N, C))

    if norm_style == 'bn':
        # TODO(synk): training-mode batch statistics only; eval-mode running stats
        # and momentum bookkeeping are not modeled.
        fuse = _bn_fuse
        if fuse is None:
            fuse = (N * _pad_to(C, 8) * _pad_to(HW, 128) * 4) <= _BN_FUSED_MAX_BYTES
        if fuse:
            out3 = _run_bn_fused(x.reshape(N, C, HW),
                                 g_nc.reshape(N, C, 1), b_nc.reshape(N, C, 1), eps=eps)
            return out3.reshape(N, C, H, W)
        # Phase 1: per-channel partial sums (x read once).
        ps, pq = _run_bn_stats(x.reshape(N, C, HW), hw_block=_hw_block)
        cnt = jnp.float32(N * HW)
        mean = jnp.sum(ps, axis=(0, 2)) / cnt                  # (C,) f32
        var = jnp.maximum(jnp.sum(pq, axis=(0, 2)) / cnt - mean * mean, 0.0)
        scale = lax.rsqrt(var + eps)
        a_nc = g_nc.astype(jnp.float32) * scale[None, :]       # (N, C)
        c_nc = b_nc.astype(jnp.float32) - mean[None, :] * a_nc
        # Phase 2: single fused mul-add per element.
        out2 = _run_row_scale_shift(x.reshape(N * C, HW),
                                    a_nc.reshape(N * C, 1), c_nc.reshape(N * C, 1),
                                    row_block=_row_block)
    elif norm_style == 'in':
        out2 = _run_inst_norm(x.reshape(N * C, HW),
                              g_nc.reshape(N * C, 1), b_nc.reshape(N * C, 1),
                              eps=eps, row_block=_row_block)
    elif norm_style.startswith('gn'):
        G = get_groupnorm_groups(C, norm_style)
        if C % G != 0:
            raise ValueError(f"channels {C} not divisible by groups {G}")
        Cg = C // G
        if Cg == 1:  # group == channel: identical to instance norm with per-channel affine
            out2 = _run_inst_norm(x.reshape(N * C, HW),
                                  g_nc.reshape(N * C, 1), b_nc.reshape(N * C, 1),
                                  eps=eps, row_block=_row_block)
        else:
            out3 = _run_group_norm(x.reshape(N * G, Cg, HW),
                                   g_nc.reshape(N * G, Cg, 1),
                                   b_nc.reshape(N * G, Cg, 1),
                                   eps=eps, row_block=_row_block)
            return out3.reshape(N, C, H, W)
    elif norm_style == 'nonorm':
        out2 = _run_row_scale_shift(x.reshape(N * C, HW),
                                    g_nc.astype(jnp.float32).reshape(N * C, 1),
                                    b_nc.astype(jnp.float32).reshape(N * C, 1),
                                    row_block=_row_block)
    else:
        raise ValueError(norm_style)

    return out2.reshape(N, C, H, W)


# ----------------------------------------------------------------------------
# Pure-JAX reference (mirrors the PyTorch forward semantics)
# ----------------------------------------------------------------------------
def configurable_norm_ref(x, gain, bias, *, norm_style='bn',
                          input_gain_bias=False, eps=1e-5):
    N, C, H, W = x.shape
    xf = x.astype(jnp.float32)
    if norm_style == 'bn':
        mean = xf.mean(axis=(0, 2, 3), keepdims=True)
        var = xf.var(axis=(0, 2, 3), keepdims=True)
        out = (xf - mean) / jnp.sqrt(var + eps)
    elif norm_style == 'in':
        mean = xf.mean(axis=(2, 3), keepdims=True)
        var = xf.var(axis=(2, 3), keepdims=True)
        out = (xf - mean) / jnp.sqrt(var + eps)
    elif norm_style.startswith('gn'):
        G = get_groupnorm_groups(C, norm_style)
        xg = xf.reshape(N, G, -1)
        mean = xg.mean(axis=2, keepdims=True)
        var = xg.var(axis=2, keepdims=True)
        out = ((xg - mean) / jnp.sqrt(var + eps)).reshape(N, C, H, W)
    elif norm_style == 'nonorm':
        out = xf
    else:
        raise ValueError(norm_style)

    if input_gain_bias:
        g = gain.reshape(N, -1, 1, 1)
        b = bias.reshape(N, -1, 1, 1)
    else:
        g = gain.reshape(1, -1, 1, 1)
        b = bias.reshape(1, -1, 1, 1)
    return out * g + b


if __name__ == "__main__":
    key = jax.random.PRNGKey(0)
    keys = jax.random.split(key, 7)

    # Small shapes consistent with the module.
    N, C, H, W = 2, 4, 16, 16
    x = jax.random.normal(keys[0], (N, C, H, W), dtype=jnp.float32)
    # Module parameters after reset_parameters(): gain=ones, bias=zeros.
    gain_param = jnp.ones((C,), dtype=jnp.float32)
    bias_param = jnp.zeros((C,), dtype=jnp.float32)
    # External per-sample gain/bias (input_gain_bias=True path).
    gain_ext = jax.random.normal(keys[1], (N, C), dtype=jnp.float32)
    bias_ext = jax.random.normal(keys[2], (N, C), dtype=jnp.float32)

    # Slightly larger tensor to exercise multi-block grids / two-pass BN.
    N2, C2 = 4, 8
    x2 = jax.random.normal(keys[3], (N2, C2, H, W), dtype=jnp.float32) * 1.5 + 0.3
    gain2_param = jnp.ones((C2,), dtype=jnp.float32)
    bias2_param = jnp.zeros((C2,), dtype=jnp.float32)
    gain2_ext = jax.random.normal(keys[4], (N2, C2), dtype=jnp.float32)
    bias2_ext = jax.random.normal(keys[5], (N2, C2), dtype=jnp.float32)

    # Non-128-multiple spatial size: exercises full-HW blocks + BN stats lane fallback.
    x_odd = jax.random.normal(keys[6], (2, 4, 10, 10), dtype=jnp.float32)

    cases = [
        (x, gain_param, bias_param, dict(norm_style='bn', input_gain_bias=False)),   # fused BN
        (x, gain_ext, bias_ext, dict(norm_style='in', input_gain_bias=True)),
        (x, gain_ext, bias_ext, dict(norm_style='gn_ch_2', input_gain_bias=True)),
        (x, gain_param, bias_param, dict(norm_style='gn_grp_2', input_gain_bias=False)),
        (x, gain_param, bias_param, dict(norm_style='nonorm', input_gain_bias=False)),
        # Two-pass BN (parallel-over-N stats grid + HW tiles) and multi-block grids.
        (x2, gain2_ext, bias2_ext, dict(norm_style='bn', input_gain_bias=True,
                                        _bn_fuse=False, _hw_block=128, _row_block=8)),
        (x2, gain2_ext, bias2_ext, dict(norm_style='in', input_gain_bias=True, _row_block=8)),
        (x2, gain2_ext, bias2_ext, dict(norm_style='gn_ch_2', input_gain_bias=True, _row_block=8)),
        (x2, gain2_param, bias2_param, dict(norm_style='gn_grp_2', input_gain_bias=False)),
        # HW not a multiple of 128.
        (x_odd, gain_param, bias_param, dict(norm_style='bn', input_gain_bias=False,
                                             _bn_fuse=False)),
        (x_odd, gain_param, bias_param, dict(norm_style='in', input_gain_bias=False)),
    ]

    ok = True
    for xi, g, b, cfg in cases:
        kw = dict(cfg)
        ns = kw['norm_style']
        igb = kw['input_gain_bias']
        out = configurable_norm_pallas(xi, g, b, **kw)
        out = jax.block_until_ready(out)
        ref = configurable_norm_ref(xi, g, b, norm_style=ns, input_gain_bias=igb)
        if not np.allclose(np.asarray(out), np.asarray(ref), atol=1e-3, rtol=1e-3):
            ok = False
            err = float(np.max(np.abs(np.asarray(out) - np.asarray(ref))))
            overrides = {k: v for k, v in kw.items() if k.startswith('_')}
            print(f"MISMATCH norm_style={ns} input_gain_bias={igb} "
                  f"overrides={overrides} max_err={err}")

    if ok:
        print("KERNEL_OK")
</pallas_src>

<mosaic_0001>
module attributes {stable_mosaic.version = 11 : i64} {
  func.func @_bn_fused_kernel(%arg0: memref<2x4x256xf32, #tpu.memory_space<vmem>>, %arg1: memref<2x4x1xf32, #tpu.memory_space<vmem>>, %arg2: memref<2x4x1xf32, #tpu.memory_space<vmem>>, %arg3: memref<2x4x256xf32, #tpu.memory_space<vmem>>) attributes {dimension_semantics = [], scalar_prefetch = 0 : i64, scratch_operands = 0 : i64, tpu.core_type = #tpu.core_type<tc>} {
    %c0 = arith.constant 0 : index
    %c0_0 = arith.constant 0 : index
    %c0_1 = arith.constant 0 : index
    %0 = vector.load %arg0[%c0, %c0_0, %c0_1] : memref<2x4x256xf32, #tpu.memory_space<vmem>>, vector<2x4x256xf32>
    %cst = arith.constant dense<0.000000e+00> : vector<2x4xf32>
    %1 = vector.multi_reduction <add>, %0, %cst [2] : vector<2x4x256xf32> to vector<2x4xf32>
    %2 = vector.shape_cast %1 : vector<2x4xf32> to vector<2x4x1xf32>
    %cst_2 = arith.constant dense<0.000000e+00> : vector<4x1xf32>
    %3 = vector.multi_reduction <add>, %2, %cst_2 [0] : vector<2x4x1xf32> to vector<4x1xf32>
    %4 = vector.shape_cast %3 : vector<4x1xf32> to vector<1x4x1xf32>
    %5 = arith.mulf %0, %0 : vector<2x4x256xf32>
    %cst_3 = arith.constant dense<0.000000e+00> : vector<2x4xf32>
    %6 = vector.multi_reduction <add>, %5, %cst_3 [2] : vector<2x4x256xf32> to vector<2x4xf32>
    %7 = vector.shape_cast %6 : vector<2x4xf32> to vector<2x4x1xf32>
    %cst_4 = arith.constant dense<0.000000e+00> : vector<4x1xf32>
    %8 = vector.multi_reduction <add>, %7, %cst_4 [0] : vector<2x4x1xf32> to vector<4x1xf32>
    %9 = vector.shape_cast %8 : vector<4x1xf32> to vector<1x4x1xf32>
    %cst_5 = arith.constant 5.120000e+02 : f32
    %10 = vector.broadcast %cst_5 : f32 to vector<1x4x1xf32>
    %11 = arith.divf %4, %10 : vector<1x4x1xf32>
    %cst_6 = arith.constant 5.120000e+02 : f32
    %12 = vector.broadcast %cst_6 : f32 to vector<1x4x1xf32>
    %13 = arith.divf %9, %12 : vector<1x4x1xf32>
    %14 = arith.mulf %11, %11 : vector<1x4x1xf32>
    %15 = arith.subf %13, %14 : vector<1x4x1xf32>
    %cst_7 = arith.constant 0.000000e+00 : f32
    %16 = vector.broadcast %cst_7 : f32 to vector<1x4x1xf32>
    %17 = arith.maximumf %15, %16 : vector<1x4x1xf32>
    %cst_8 = arith.constant 9.99999974E-6 : f32
    %18 = vector.broadcast %cst_8 : f32 to vector<1x4x1xf32>
    %19 = arith.addf %17, %18 : vector<1x4x1xf32>
    %20 = math.rsqrt %19 : vector<1x4x1xf32>
    %c0_9 = arith.constant 0 : index
    %c0_10 = arith.constant 0 : index
    %c0_11 = arith.constant 0 : index
    %21 = vector.load %arg1[%c0_9, %c0_10, %c0_11] : memref<2x4x1xf32, #tpu.memory_space<vmem>>, vector<2x4x1xf32>
    %22 = vector.broadcast %20 : vector<1x4x1xf32> to vector<2x4x1xf32>
    %23 = arith.mulf %21, %22 : vector<2x4x1xf32>
    %c0_12 = arith.constant 0 : index
    %c0_13 = arith.constant 0 : index
    %c0_14 = arith.constant 0 : index
    %24 = vector.load %arg2[%c0_12, %c0_13, %c0_14] : memref<2x4x1xf32, #tpu.memory_space<vmem>>, vector<2x4x1xf32>
    %25 = vector.broadcast %11 : vector<1x4x1xf32> to vector<2x4x1xf32>
    %26 = arith.mulf %25, %23 : vector<2x4x1xf32>
    %27 = arith.subf %24, %26 : vector<2x4x1xf32>
    %28 = vector.broadcast %23 : vector<2x4x1xf32> to vector<2x4x256xf32>
    %29 = arith.mulf %0, %28 : vector<2x4x256xf32>
    %30 = vector.broadcast %27 : vector<2x4x1xf32> to vector<2x4x256xf32>
    %31 = arith.addf %29, %30 : vector<2x4x256xf32>
    %c0_15 = arith.constant 0 : index
    %c0_16 = arith.constant 0 : index
    %c0_17 = arith.constant 0 : index
    %32 = vector.load %arg3[%c0_15, %c0_16, %c0_17] : memref<2x4x256xf32, #tpu.memory_space<vmem>>, vector<2x4x256xf32>
    tpu.vector_store %arg3[%c0_15, %c0_16, %c0_17], %31 {strides = array<i32>} : memref<2x4x256xf32, #tpu.memory_space<vmem>>, vector<2x4x256xf32>,
    return
  }
}

</mosaic_0001>

<bundles_post_ra>
// kernel: tpu_custom_call.1
= control target key start
LH: loop header
LB: loop body
LE: loop exit
PB: predicated region body
PF: predicated region fallthrough
CT: control target
= control target key end

     0   :  { %vm23_vm0 = vcmask 1043456   ;;  %s264_s0 = inlined_call_operand.vmem [shape: f32[2,4,256], index: 0, kind: input, shape index: {}]   ;;  %s265_s1 = inlined_call_operand.vmem [shape: f32[2,4,1], index: 1, kind: input, shape index: {}]   ;;  %s266_s2 = inlined_call_operand.vmem [shape: f32[2,4,1], index: 2, kind: input, shape index: {}]   ;;  %s267_s3 = inlined_call_operand.hbm [shape: f32[2,4,256], index: 3, kind: output, shape index: {}]  }
   0x1   :  { %v209_v0 = vld [vmem:[%s264_s0] sm:$0xff]  ;;  %v214_v1 = vld [vmem:[%s264_s0 + $0x8] sm:$0xff] }
   0x2   :  { %8 = vsyncpa [#allocation3], 0  ;;  %v19_v2 = vcombine.high %v209_v0, %v209_v0  ;;  %v24_v3 = vsel %vm23_vm0, %v209_v0, 0.0  ;;  %v37_v4 = vmul.f32 %v209_v0, %v209_v0  ;;  %v20_v5 = vcombine.high %v214_v1, %v214_v1  ;;  %v67_v37 = vld [vmem:[%s265_s1 + $0x4] sm:$0xf] }
   0x3   :  { %v29_v6 = vsel %vm23_vm0, %v214_v1, 0.0  ;;  %v38_v7 = vmul.f32 %v214_v1, %v214_v1  ;;  %v181_v20 = vmov 0   ;;  %v66_v38 = vld [vmem:[%s265_s1] sm:$0xf]  ;;  %v71_v46 = vld [vmem:[%s266_s2 + $0x4] sm:$0xf]  ;;  %v87_v50 = vlaneseq }
   0x4   :  { %v25_v8 = vsel %vm23_vm0, %v19_v2, 0.0  ;;  %v41_v9 = vcombine.high %v37_v4, %v37_v4  ;;  %v45_v10 = vsel %vm23_vm0, %v37_v4, 0.0  ;;  %v30_v11 = vsel %vm23_vm0, %v20_v5, 0.0  ;;  %152 = vset.pattern.permute.xlu1 %v181_v20  ;;  %151 = vset.pattern.permute.xlu0 %v181_v20  ;;  %v70_v42 = vld [vmem:[%s266_s2] sm:$0xf]  ;;  %s183_s1 = smov [#allocation2]  }
   0x5   :  { %v26_v12 = vadd.f32 %v25_v8, %v24_v3  ;;  %v42_v13 = vcombine.high %v38_v7, %v38_v7  ;;  %v50_v15 = vsel %vm23_vm0, %v38_v7, 0.0  ;;  %v31_v17 = vadd.f32 %v30_v11, %v29_v6  ;;  %s135_s2 = sshll.u32 %s183_s1, 4  ;;  %s136_s2 = int_to_ptr.vmem [resolvable:$true] %s135_s2 }
   0x6   :  { %v46_v14 = vsel %vm23_vm0, %v41_v9, 0.0  ;;  %v182_v48 = vmov 839922192   ;;  %v88_v52 = vshrl.u32 %v87_v50, 7  ;;  %s157_s23 = scalar_lea.vmem %s136_s2, 256  ;;  %p162_p1 = scmp.lt.s32.totalorder %s136_s2, %s136_s2 }
   0x7   :  { %27 = vadd.xlane.f32.xlu0 %v26_v12  ;;  %v47_v16 = vadd.f32 %v46_v14, %v45_v10  ;;  %v51_v18 = vsel %vm23_vm0, %v42_v13, 0.0  ;;  %v85_v49 = vunpack.c.l.s4 %v182_v48  ;;  %p158_p0 = scmp.ne.s32.totalorder %s136_s2, %s157_s23  ;;  %p163_p2 = scmp.lt.s32.totalorder %s157_s23, %s157_s23 }
   0x8   :  { %v52_v19 = vadd.f32 %v51_v18, %v50_v15 }
   0x9   :  { %48 = vadd.xlane.f32.xlu1 %v47_v16  ;;  %v86_v51 = vunpack.c.0.s8 %v85_v49  ;;  %p164_p3 = por %p163_p2, %p162_p1 }
   0xb   :  { %32 = vadd.xlane.f32.xlu0 %v31_v17  ;;  %v89_v53 = vsub.s32 %v86_v51, %v88_v52  ;;  %p165_p4 = pnand %p164_p3, %p158_p0 }
   0xd   :  { %53 = vadd.xlane.f32.xlu1 %v52_v19 }
  0x94   :  { %v28_v21 = vpop.xlane.xlu0 %27 }
  0x95   :  { %v34_v24 = vsel %vm23_vm0, %v28_v21, 0.0 }
  0x96   :  { %v49_v22 = vpop.xlane.xlu1 %48 }
  0x97   :  { %v55_v28 = vsel %vm23_vm0, %v49_v22, 0.0 }
  0x98   :  { %v33_v23 = vpop.xlane.xlu0 %32 }
  0x99   :  { %v35_v25 = vsel %vm23_vm0, %v33_v23, 0.0 }
  0x9a   :  { %v36_v26 = vadd.f32 %v35_v25, %v34_v24  ;;  %v54_v27 = vpop.xlane.xlu1 %53 }
  0x9b   :  { %v56_v29 = vsel %vm23_vm0, %v54_v27, 0.0 }
  0x9c   :  { %v59_v30 = vmul.f32 0.001953125, %v36_v26  ;;  %v57_v31 = vadd.f32 %v56_v29, %v55_v28 }
  0x9e   :  { %v60_v32 = vmul.f32 0.001953125, %v57_v31  ;;  %v61_v33 = vmul.f32 %v59_v30, %v59_v30 }
  0xa0   :  { %v62_v34 = vsub.f32 %v60_v32, %v61_v33 }
  0xa2   :  { %v63_v35 = vmax.f32 %v62_v34, 0.0 }
  0xa4   :  { %v64_v36 = vadd.f32 1e-05, %v63_v35 }
  0xa6   :  { %155 = vrsqrt.f32 %v64_v36 }
  0xb0   :  { %v156_v39 = vpop.eup %155 }
  0xb1   :  { %v69_v40 = vmul.f32 %v156_v39, %v67_v37  ;;  %v68_v41 = vmul.f32 %v156_v39, %v66_v38 }
  0xb3   :  { %82 = vperm.xlu1 %152, %v69_v40   ;;  %78 = vperm.xlu0 %151, %v68_v41   ;;  %v72_v43 = vmul.f32 %v68_v41, %v59_v30  ;;  %v73_v45 = vmul.f32 %v69_v40, %v59_v30 }
  0xb5   :  { %v74_v44 = vsub.f32 %v70_v42, %v72_v43  ;;  %v75_v47 = vsub.f32 %v71_v46, %v73_v45 }
  0xb7   :  { %104 = vperm.xlu1 %152, %v74_v44  }
  0xbb   :  { %108 = vperm.xlu1 %152, %v75_v47  }
 0x132   :  { %v83_v54 = vpop.permute.xlu1 %82  ;;  %v79_v55 = vpop.permute.xlu0 %78 }
 0x133   :  { %v90_v56 = vrot.slane %v79_v55, %v89_v53  ;;  %v97_v58 = vrot.slane %v83_v54, %v89_v53 }
 0x135   :  { %v100_v59 = vmul.f32 %v90_v56, %v209_v0  ;;  %v101_v63 = vmul.f32 %v97_v58, %v214_v1 }
 0x136   :  { %v105_v57 = vpop.permute.xlu1 %104 }
 0x137   :  { %v116_v60 = vrot.slane %v105_v57, %v89_v53 }
 0x139   :  { %v126_v61 = vadd.f32 %v116_v60, %v100_v59 }
 0x13a   :  { %v109_v62 = vpop.permute.xlu1 %108 }
 0x13b   :  { %128 = vst [vmem:[#allocation2] sm:$0xff] %v126_v61  ;;  %v123_v2 = vrot.slane %v109_v62, %v89_v53 }
 0x13d   :  { %v127_v3 = vadd.f32 %v123_v2, %v101_v63 }
 0x13f   :  { %129 = vst [vmem:[#allocation2 + $0x8] sm:$0xff] %v127_v3 }
 0x140   :  { %168 = shalt.err (!%p165_p4)
}
 0x141   :  { %s169_s26 = scalar_lea.hbm %s267_s3, 256 }
 0x142   :  { %p170_p5 = scmp.ne.s32.totalorder %s267_s3, %s169_s26  ;;  %p173_p6 = scmp.lt.u32.totalorder %s169_s26, %s267_s3 }
 0x144   :  { %p175_p7 = pnand %p173_p6, %p170_p5 }
 0x146   :  { %178 = shalt.err (!%p175_p7)
}
 0x147   :  { %s184_s4 = smov 128   ;;  %s185_s5 = smov 8  }
 0x148   :  { %141 = dma.vmem_to_hbm [thread:$0]  %s136_s2, 256, %s267_s3, [#allocation3], %s184_s4, %s184_s4, %s185_s5  }
 0x149   :  { %179 = dma.done.wait [#allocation3], 256  }
 0x14a   :  { %180 = vsyncadd [#allocation3], 4294967040 }
 0x14b   :  { %145 = vsyncpa [#allocation3], 1 }

</bundles_post_ra>
